<compile_context>
chip_gen: v6e
topology: v6e:2x2x1
jax: 0.10.0
libtpu: 0.0.40
codegen_flags: <defaults>
</compile_context>

<pallas_src>
import functools

import jax
import jax.numpy as jnp
from jax.experimental import pallas as pl
from jax.experimental.pallas import tpu as pltpu

IN_FEATURES = 28
OUT_FEATURES = 3
N_PAD = 8            # narrow padded output width (last dim == full array dim -> legal)
_NEG_LARGE = -1e30   # bias pad value -> padded scores ~ -1e30 -> exp() == 0 in softmax


def _regression_kernel(x_ref, wt_ref, b_ref, o_ref):
    # x_ref: (TB, 28)   wt_ref: (28, 8)   b_ref: (1, 8)   o_ref: (TB, 8)
    # Linear: x @ W^T, with W already transposed/padded on the host -> no in-kernel .T
    scores = jnp.dot(x_ref[...], wt_ref[...],
                     preferred_element_type=jnp.float32) + b_ref[...]
    # Numerically-stable log-softmax over the (padded-to-8) feature lanes.
    m = jnp.max(scores, axis=-1, keepdims=True)
    shifted = scores - m
    lse = jnp.log(jnp.sum(jnp.exp(shifted), axis=-1, keepdims=True))
    o_ref[...] = (shifted - lse).astype(o_ref.dtype)


def _round_up(n, m):
    return ((n + m - 1) // m) * m


def pad_params(weight, bias):
    """One-time parameter prep: pre-transposed, pad-lane weight + bias."""
    wt_pad = (jnp.zeros((IN_FEATURES, N_PAD), jnp.float32)
              .at[:, :OUT_FEATURES].set(weight.T.astype(jnp.float32)))
    b_pad = (jnp.full((1, N_PAD), _NEG_LARGE, jnp.float32)
             .at[0, :OUT_FEATURES].set(bias.astype(jnp.float32)))
    return wt_pad, b_pad


@functools.partial(jax.jit, static_argnames=("block_b",))
def regression_forward_pallas(x, wt_pad, b_pad, *, block_b=4096):
    """Linear(28, 3) + LogSoftmax via a batch-tiled Pallas kernel.

    x: (B, 28) f32, wt_pad: (28, 8) f32, b_pad: (1, 8) f32.  Returns (B, 3) log-probs.
    """
    B = x.shape[0]

    # Adaptive batch tiling: bound padding to a few sublanes per tile, and make sure
    # big batches get >= 2 grid steps so v7x's 2 TensorCores both get work.
    num_tiles = max(1, -(-B // block_b))           # cdiv(B, block_b)
    if num_tiles == 1 and B >= 2048:
        num_tiles = 2
    TB = _round_up(-(-B // num_tiles), 8)          # sublane-aligned per-tile rows
    B_pad = TB * num_tiles
    if B_pad != B:
        x = jnp.pad(x, ((0, B_pad - B), (0, 0)))   # padded rows sliced off below

    cost = pl.CostEstimate(
        flops=2 * B_pad * IN_FEATURES * N_PAD,
        transcendentals=B_pad * N_PAD + B_pad,     # exp per lane + log per row
        bytes_accessed=4 * (B_pad * IN_FEATURES + IN_FEATURES * N_PAD
                            + N_PAD + B_pad * N_PAD),
    )

    out = pl.pallas_call(
        _regression_kernel,
        out_shape=jax.ShapeDtypeStruct((B_pad, N_PAD), jnp.float32),
        grid=(num_tiles,),
        in_specs=[
            pl.BlockSpec((TB, IN_FEATURES), lambda i: (i, 0)),     # x: batch-tiled
            pl.BlockSpec((IN_FEATURES, N_PAD), lambda i: (0, 0)),  # W^T: resident
            pl.BlockSpec((1, N_PAD), lambda i: (0, 0)),            # bias: resident
        ],
        out_specs=pl.BlockSpec((TB, N_PAD), lambda i: (i, 0)),     # narrow output
        compiler_params=pltpu.CompilerParams(
            dimension_semantics=("parallel",),                     # 2 TCs on v7x
        ),
        cost_estimate=cost,
    )(x, wt_pad, b_pad)

    # Slice fuses with the pallas_call under jit; only (B_pad, 8) f32 is re-read.
    return out[:B, :OUT_FEATURES]


def regression_forward(x, weight, bias, *, force_pallas=False):
    """Dispatch: tiny batches let XLA fuse (kernel overhead dominates); otherwise Pallas."""
    if not force_pallas and x.shape[0] < 512:
        return jax.nn.log_softmax(x @ weight.T + bias, axis=-1)
    wt_pad, b_pad = pad_params(weight, bias)
    return regression_forward_pallas(x, wt_pad, b_pad)


class RegressionPallas:
    """Mirror of the PyTorch Regression module (Linear(28,3) + LogSoftmax)."""

    def __init__(self, key):
        kw, kb = jax.random.split(key)
        # PyTorch nn.Linear default init: U(-1/sqrt(fan_in), 1/sqrt(fan_in))
        bound = 1.0 / (IN_FEATURES ** 0.5)
        self.weight = jax.random.uniform(
            kw, (OUT_FEATURES, IN_FEATURES), jnp.float32, -bound, bound)
        self.bias = jax.random.uniform(
            kb, (OUT_FEATURES,), jnp.float32, -bound, bound)
        # Hoist padded-parameter construction out of the hot path (done once).
        self.wt_pad, self.b_pad = pad_params(self.weight, self.bias)

    def __call__(self, x, *, force_pallas=False):
        print("x", x)                                   # host-side print, as in PyTorch
        if not force_pallas and x.shape[0] < 512:
            probs = jax.nn.log_softmax(x @ self.weight.T + self.bias, axis=-1)
        else:
            probs = regression_forward_pallas(x, self.wt_pad, self.b_pad)
        print("probs", probs)                           # (log-probabilities, per module)
        return probs


if __name__ == "__main__":
    key = jax.random.PRNGKey(0)
    k_params, k_x = jax.random.split(key)

    model = RegressionPallas(k_params)

    batch = 8
    x = jax.random.normal(k_x, (batch, IN_FEATURES), dtype=jnp.float32)

    # Force the Pallas path so the kernel is actually exercised at this small batch.
    probs = model(x, force_pallas=True)
    jax.block_until_ready(probs)

    # Sanity check against plain-JAX reference (same math as torch Linear + LogSoftmax).
    scores_ref = x @ model.weight.T + model.bias
    ref = jax.nn.log_softmax(scores_ref, axis=-1)
    assert probs.shape == (batch, OUT_FEATURES)
    assert jnp.allclose(probs, ref, atol=1e-5, rtol=1e-5)

    # Also exercise a larger, non-tile-aligned batch through the Pallas path
    # (adaptive TB + padding + multi-step grid) and validate it.
    big_b = 3000
    xb = jax.random.normal(jax.random.PRNGKey(1), (big_b, IN_FEATURES), jnp.float32)
    probs_big = regression_forward(xb, model.weight, model.bias, force_pallas=True)
    jax.block_until_ready(probs_big)
    ref_big = jax.nn.log_softmax(xb @ model.weight.T + model.bias, axis=-1)
    assert probs_big.shape == (big_b, OUT_FEATURES)
    assert jnp.allclose(probs_big, ref_big, atol=1e-5, rtol=1e-5)

    print("KERNEL_OK")
</pallas_src>

<mosaic_0001>
module attributes {stable_mosaic.version = 11 : i64} {
  func.func @_regression_kernel(%arg0: i32, %arg1: memref<8x28xf32, #tpu.memory_space<vmem>>, %arg2: memref<28x8xf32, #tpu.memory_space<vmem>>, %arg3: memref<1x8xf32, #tpu.memory_space<vmem>>, %arg4: memref<8x8xf32, #tpu.memory_space<vmem>>) attributes {dimension_semantics = [#tpu.dimension_semantics<parallel>], iteration_bounds = array<i64: 1>, scalar_prefetch = 0 : i64, scratch_operands = 0 : i64, tpu.core_type = #tpu.core_type<tc>, window_params = [{transform_indices = @transform_0, window_bounds = array<i64: 8, 28>}, {pipeline_mode = #tpu.pipeline_mode<synchronous>, transform_indices = @transform_1, window_bounds = array<i64: 28, 8>}, {pipeline_mode = #tpu.pipeline_mode<synchronous>, transform_indices = @transform_2, window_bounds = array<i64: 1, 8>}, {transform_indices = @transform_3, window_bounds = array<i64: 8, 8>}]} {
    %c0 = arith.constant 0 : index
    %c0_0 = arith.constant 0 : index
    %0 = vector.load %arg1[%c0, %c0_0] : memref<8x28xf32, #tpu.memory_space<vmem>>, vector<8x28xf32>
    %c0_1 = arith.constant 0 : index
    %c0_2 = arith.constant 0 : index
    %1 = vector.load %arg2[%c0_1, %c0_2] : memref<28x8xf32, #tpu.memory_space<vmem>>, vector<28x8xf32>
    %cst = arith.constant dense<0.000000e+00> : vector<8x8xf32>
    %2 = tpu.matmul %0, %1, %cst {dimension_numbers = #tpu.dot_dimension_numbers<[1], [0], [0], [1], [0, 0, 1, 1], [], []>} : vector<8x28xf32>, vector<28x8xf32>, vector<8x8xf32> -> vector<8x8xf32>
    %c0_3 = arith.constant 0 : index
    %c0_4 = arith.constant 0 : index
    %3 = vector.load %arg3[%c0_3, %c0_4] : memref<1x8xf32, #tpu.memory_space<vmem>>, vector<1x8xf32>
    %4 = vector.broadcast %3 : vector<1x8xf32> to vector<8x8xf32>
    %5 = arith.addf %2, %4 : vector<8x8xf32>
    %cst_5 = arith.constant dense<0xFF800000> : vector<8xf32>
    %6 = vector.multi_reduction <maximumf>, %5, %cst_5 [1] : vector<8x8xf32> to vector<8xf32>
    %7 = vector.shape_cast %6 : vector<8xf32> to vector<8x1xf32>
    %8 = vector.broadcast %7 : vector<8x1xf32> to vector<8x8xf32>
    %9 = arith.subf %5, %8 : vector<8x8xf32>
    %10 = math.exp %9 : vector<8x8xf32>
    %cst_6 = arith.constant dense<0.000000e+00> : vector<8xf32>
    %11 = vector.multi_reduction <add>, %10, %cst_6 [1] : vector<8x8xf32> to vector<8xf32>
    %12 = vector.shape_cast %11 : vector<8xf32> to vector<8x1xf32>
    %13 = math.log %12 : vector<8x1xf32>
    %14 = vector.broadcast %13 : vector<8x1xf32> to vector<8x8xf32>
    %15 = arith.subf %9, %14 : vector<8x8xf32>
    %c0_7 = arith.constant 0 : index
    %c0_8 = arith.constant 0 : index
    %16 = vector.load %arg4[%c0_7, %c0_8] : memref<8x8xf32, #tpu.memory_space<vmem>>, vector<8x8xf32>
    tpu.vector_store %arg4[%c0_7, %c0_8], %15 {strides = array<i32>} : memref<8x8xf32, #tpu.memory_space<vmem>>, vector<8x8xf32>,
    return
  }
  func.func @transform_0(%arg0: i32) -> (i32, i32) {
    %c0_i32 = arith.constant 0 : i32
    %c0_i32_0 = arith.constant 0 : i32
    return %arg0, %c0_i32 : i32, i32
  }
  func.func @transform_1(%arg0: i32) -> (i32, i32) {
    %c0_i32 = arith.constant 0 : i32
    %c0_i32_0 = arith.constant 0 : i32
    %c0_i32_1 = arith.constant 0 : i32
    return %c0_i32, %c0_i32_0 : i32, i32
  }
  func.func @transform_2(%arg0: i32) -> (i32, i32) {
    %c0_i32 = arith.constant 0 : i32
    %c0_i32_0 = arith.constant 0 : i32
    %c0_i32_1 = arith.constant 0 : i32
    return %c0_i32, %c0_i32_0 : i32, i32
  }
  func.func @transform_3(%arg0: i32) -> (i32, i32) {
    %c0_i32 = arith.constant 0 : i32
    %c0_i32_0 = arith.constant 0 : i32
    return %arg0, %c0_i32 : i32, i32
  }
}

</mosaic_0001>

<bundles_post_ra>
// kernel: regression_forward_pallas.1
= control target key start
LH: loop header
LB: loop body
LE: loop exit
PB: predicated region body
PF: predicated region fallthrough
CT: control target
= control target key end

     0   :  { %vm30_vm0 = vcmask 1043456   ;;  %v147_v0 = vmov 0.0   ;;  %vm148_vm1 = vmmov 0   ;;  %vm26_vm2 = vcmask 228352   ;;  %s193_s1 = inlined_call_operand.vmem [shape: f32[28,8], index: 1, kind: input, shape index: {}]   ;;  %s194_s0 = inlined_call_operand.vmem [shape: f32[8,28], index: 0, kind: input, shape index: {}]   ;;  %s195_s2 = inlined_call_operand.vmem [shape: f32[1,8], index: 2, kind: input, shape index: {}]   ;;  %s196_s3 = inlined_call_operand.vmem [shape: f32[8,8], index: 3, kind: output, shape index: {}]  }
   0x1   :  { %130 = vmatprep.subr.mxu0 %v147_v0  ;;  %v18_v1 = vld [vmem:[%s193_s1 + $0x18] sm:$0xf]  ;;  %v17_v2 = vld [vmem:[%s193_s1 + $0x10] sm:$0xff]  ;;  %138 = vmatprep.mubr.msk.f32.mxu0 %vm148_vm1, %v147_v0  ;;  %v16_v3 = vld [vmem:[%s193_s1 + $0x8] sm:$0xff]  ;;  %vm104_vm3 = vcmask 64512  }
   0x2   :  { %131 = vmatpush3.msk.msra.mxu0 %vm30_vm0, %v18_v1  ;;  %v15_v4 = vld [vmem:[%s193_s1] sm:$0xff] }
   0x3   :  { %132 = vmatprep.subr.mxu0 %v147_v0  ;;  %v14_v5 = vld [vmem:[%s194_s0] sm:$0xff] }
   0x4   :  { %133 = vmatpush3.msra.mxu0 %v17_v2  ;;  %v122_v6 = vld [vmem:[%s195_s2] ss:$0 sm:$0xff] }
   0x5   :  { %134 = vmatprep.subr.mxu0 %v147_v0 }
   0x6   :  { %135 = vmatpush3.msra.mxu0 %v16_v3 }
   0x7   :  { %136 = vmatprep.subr.mxu0 %v147_v0 }
   0x8   :  { %137 = vmatpush3.msra.mxu0 %v15_v4 }
   0x9   :  { %139 = vmatmul.mubr.msk.f32.vlgmr.msra.gmra.mxu0 %vm26_vm2, %v14_v5 }
  0xc9   :  { %v100_v7 = vpop.f32.mrf.mxu0 }
  0xca   :  { %v101_v8 = vadd.f32 %v122_v6, %v100_v7 }
  0xcb   :  { %v140_v9 = vpop.f32.mrf.mxu0 }
  0xcc   :  { %v105_v10 = vsel %vm104_vm3, %v101_v8, -inf }
  0xcd   :  { %106 = vmax.xlane.f32.xlu0 %v105_v10 }
 0x156   :  { %v107_v11 = vpop.xlane.xlu0 %106 }
 0x157   :  { %v108_v12 = vsub.f32 %v101_v8, %v107_v11 }
 0x159   :  { %v109_v13 = vmul.f32 1.442695, %v108_v12 }
 0x15b   :  { %143 = vpow2.f32 %v109_v13 }
 0x168   :  { %v144_v14 = vpop.eup %143 }
 0x169   :  { %v111_v15 = vsel %vm104_vm3, %v144_v14, 0.0 }
 0x16a   :  { %112 = vadd.xlane.f32.xlu0 %v111_v15 }
 0x1f3   :  { %v113_v16 = vpop.xlane.xlu0 %112 }
 0x1f4   :  { %145 = vlog2.f32 %v113_v16 }
 0x201   :  { %v146_v17 = vpop.eup %145 }
 0x202   :  { %v115_v18 = vmul.f32 0.6931472, %v146_v17 }
 0x204   :  { %v116_v19 = vsub.f32 %v108_v12, %v115_v18 }
 0x206   :  { %117 = vst.msk [vmem:[%s196_s3] sm:$0xff] %vm104_vm3, %v116_v19 }

</bundles_post_ra>
